<compile_context>
chip_gen: v7x
topology: tpu7x:2x2x1
jax: 0.10.0
libtpu: 0.0.40
codegen_flags: <defaults>
</compile_context>

<pallas_src>
import functools
import math

import jax
import jax.numpy as jnp
from jax import lax
from jax.experimental import pallas as pl
from jax.experimental.pallas import tpu as pltpu

LANES = 128        # batch elements per lane row
CH = 8             # sublane rows per inner compute chunk (one f32 vreg: 8x128)
MAX_TR = 512       # max sublane rows per grid step (block): up to 65536 batch/step
MIN_SPLIT_TR = 64  # don't split into multiple blocks below ~480 KiB/block
N_PLANES = 15      # 6 ortho6d components + 9 m2 entries (row-major 3x3)

_PI = math.pi
# Abramowitz & Stegun 4.4.46 (Hastings) acos approximation on [0,1], |err|<=2e-8.
# Coefficients ordered highest degree -> constant for Horner evaluation.
_ACOS_COEFFS = (-0.0012624911, 0.0066700901, -0.0170881256, 0.0308918810,
                -0.0501743046, 0.0889789874, -0.2145988016, 1.5707963050)


def _acos_poly(x):
    """arccos via polynomial (mul/add/sqrt/select only -> always lowers)."""
    u = jnp.abs(x)
    p = jnp.float32(_ACOS_COEFFS[0])
    for c in _ACOS_COEFFS[1:]:
        p = p * u + jnp.float32(c)
    r = jnp.sqrt(jnp.maximum(1.0 - u, 0.0)) * p
    return jnp.where(x >= 0, r, jnp.float32(_PI) - r)


def _geodesic_block_kernel(B, eps, planes_ref, out_ref):
    # planes_ref: (15, TR, 128)   planes 0..5 = ortho6d, 6..14 = m2 (row-major)
    # out_ref:    (1, 128)        per-lane partial sums for this block
    TR = planes_ref.shape[1]
    n_chunks = TR // CH
    block = pl.program_id(0)

    tiny2 = jnp.float32(1e-16)          # (1e-8)^2 -> same guard as max(norm,1e-8)
    lo = jnp.float32(-1.0 + eps)
    hi = jnp.float32(1.0 - eps)

    # Hoisted tail-mask index slab (JAX does not CSE iota/broadcast_in_dim, so
    # build it ONCE per kernel invocation, not per chunk).
    lin = (lax.broadcasted_iota(jnp.int32, (CH, LANES), 0) * LANES
           + lax.broadcasted_iota(jnp.int32, (CH, LANES), 1))
    base_remaining = B - block * (TR * LANES)   # valid elements left in this block

    def chunk_theta(ci):
        # ci: chunk index within this block (python int or traced int32)
        if isinstance(ci, int):
            r0 = ci * CH
        else:
            r0 = pl.multiple_of(ci * CH, CH)
        sl = pl.ds(r0, CH)

        x0 = planes_ref[0, sl, :]
        x1 = planes_ref[1, sl, :]
        x2 = planes_ref[2, sl, :]
        y0 = planes_ref[3, sl, :]
        y1 = planes_ref[4, sl, :]
        y2 = planes_ref[5, sl, :]

        # x = normalize(x_raw)      (rsqrt on EUP instead of sqrt + 3 divides)
        inv_x = lax.rsqrt(jnp.maximum(x0 * x0 + x1 * x1 + x2 * x2, tiny2))
        x0 = x0 * inv_x
        x1 = x1 * inv_x
        x2 = x2 * inv_x

        # z = normalize(cross(x, y_raw))
        z0 = x1 * y2 - x2 * y1
        z1 = x2 * y0 - x0 * y2
        z2 = x0 * y1 - x1 * y0
        inv_z = lax.rsqrt(jnp.maximum(z0 * z0 + z1 * z1 + z2 * z2, tiny2))
        z0 = z0 * inv_z
        z1 = z1 * inv_z
        z2 = z2 * inv_z

        # y = cross(z, x)
        w0 = z1 * x2 - z2 * x1
        w1 = z2 * x0 - z0 * x2
        w2 = z0 * x1 - z1 * x0

        # m1 columns are (x, y, z); trace(m1 @ m2^T) = sum_ij m1[i,j]*m2[i,j]
        tr = (x0 * planes_ref[6, sl, :] + w0 * planes_ref[7, sl, :] + z0 * planes_ref[8, sl, :]
              + x1 * planes_ref[9, sl, :] + w1 * planes_ref[10, sl, :] + z1 * planes_ref[11, sl, :]
              + x2 * planes_ref[12, sl, :] + w2 * planes_ref[13, sl, :] + z2 * planes_ref[14, sl, :])

        cos = jnp.clip((tr - 1.0) * 0.5, lo, hi)
        theta = _acos_poly(cos)

        # Mask the padded batch tail: scalar threshold vs hoisted index slab
        # (one compare + one select per chunk).
        remaining = base_remaining - ci * (CH * LANES)
        return jnp.where(lin < remaining, theta, 0.0)

    if n_chunks == 1:
        acc = chunk_theta(0)
    else:
        unroll = True if n_chunks <= 8 else 4
        acc = lax.fori_loop(0, n_chunks,
                            lambda ci, a: a + chunk_theta(ci),
                            jnp.zeros((CH, LANES), jnp.float32),
                            unroll=unroll)

    # Per-lane partial sums for this block; final (tiny) reduction stays in JAX.
    out_ref[...] = jnp.sum(acc, axis=0, keepdims=True)


def geodesic_loss_pallas(ortho6d, m2, eps=1e-7):
    """ortho6d: [B, 6] float, m2: [B, 3, 3] float -> scalar float32 loss."""
    B = int(ortho6d.shape[0])

    R = pl.cdiv(B, LANES)                        # 128-lane rows needed
    R_ceil = ((R + CH - 1) // CH) * CH           # multiple of the chunk height

    # Block-size selection: biggest block that fits comfortably in scoped VMEM,
    # but >= 2 blocks (for v7x's 2 TCs) once each block would still be a few
    # hundred KiB.
    if R_ceil <= 2 * MIN_SPLIT_TR:
        TR = R_ceil
        n_blocks = 1
    else:
        half = (R_ceil + 1) // 2
        TR = min(MAX_TR, ((half + CH - 1) // CH) * CH)
        n_blocks = (R_ceil + TR - 1) // TR
    R_pad = n_blocks * TR
    B_pad = R_pad * LANES

    # Re-layout: batch -> (sublane-row, lane); single concatenated plane tensor
    # so the kernel sees ONE (15, TR, 128) DMA stream per grid step. Padded tail
    # is zero and masked out inside the kernel.
    flat = jnp.concatenate(
        [ortho6d.astype(jnp.float32), m2.astype(jnp.float32).reshape(B, 9)],
        axis=1)                                             # (B, 15)
    flat = jnp.pad(flat, ((0, B_pad - B), (0, 0)))          # (B_pad, 15)
    planes = flat.reshape(R_pad, LANES, N_PLANES).transpose(2, 0, 1)  # (15, R_pad, 128)

    kernel = functools.partial(_geodesic_block_kernel, B, float(eps))

    partial_sums = pl.pallas_call(
        kernel,
        out_shape=jax.ShapeDtypeStruct((1, n_blocks * LANES), jnp.float32),
        grid=(n_blocks,),
        in_specs=[pl.BlockSpec((N_PLANES, TR, LANES), lambda i: (0, i, 0))],
        out_specs=pl.BlockSpec((1, LANES), lambda i: (0, i)),
        compiler_params=pltpu.CompilerParams(
            dimension_semantics=("parallel",)),
    )(planes)

    return jnp.sum(partial_sums) / jnp.float32(B)


# ------------------- pure-JAX reference (for correctness check) -------------------
def _ref_rotation_from_ortho6d(poses):
    def normalize(v):
        mag = jnp.maximum(jnp.sqrt(jnp.sum(v * v, axis=1)), 1e-8)
        return v / mag[:, None]

    def cross(u, v):
        return jnp.stack(
            [u[:, 1] * v[:, 2] - u[:, 2] * v[:, 1],
             u[:, 2] * v[:, 0] - u[:, 0] * v[:, 2],
             u[:, 0] * v[:, 1] - u[:, 1] * v[:, 0]], axis=1)

    x = normalize(poses[:, 0:3])
    z = normalize(cross(x, poses[:, 3:6]))
    y = cross(z, x)
    return jnp.stack([x, y, z], axis=2)  # columns are x, y, z


def _ref_geodesic_loss(ortho6d, m2, eps=1e-7):
    m1 = _ref_rotation_from_ortho6d(ortho6d)
    m = jnp.einsum('bij,bkj->bik', m1, m2)
    cos = (m[:, 0, 0] + m[:, 1, 1] + m[:, 2, 2] - 1.0) / 2.0
    return jnp.mean(jnp.arccos(jnp.clip(cos, -1.0 + eps, 1.0 - eps)))


if __name__ == "__main__":
    key = jax.random.PRNGKey(0)
    keys = jax.random.split(key, 6)

    # B=8: trivial single chunk; B=200: exercises padded-lane masking
    # (not a multiple of 128); B=1500: exercises the multi-chunk fori_loop path.
    cases = ((keys[0], keys[1], 8), (keys[2], keys[3], 200), (keys[4], keys[5], 1500))
    for ka, kb, B in cases:
        ortho6d = jax.random.normal(ka, (B, 6), dtype=jnp.float32)
        m2 = _ref_rotation_from_ortho6d(
            jax.random.normal(kb, (B, 6), dtype=jnp.float32))  # valid rotations

        loss = jax.block_until_ready(geodesic_loss_pallas(ortho6d, m2))
        ref = jax.block_until_ready(_ref_geodesic_loss(ortho6d, m2))
        assert jnp.allclose(loss, ref, rtol=1e-5, atol=1e-4), (B, loss, ref)

    print("KERNEL_OK")
</pallas_src>

<mosaic_0001>
module attributes {stable_mosaic.version = 11 : i64} {
  func.func @_geodesic_block_kernel(%arg0: i32, %arg1: memref<15x8x128xf32, #tpu.memory_space<vmem>>, %arg2: memref<1x128xf32, #tpu.memory_space<vmem>>) attributes {dimension_semantics = [#tpu.dimension_semantics<parallel>], iteration_bounds = array<i64: 1>, scalar_prefetch = 0 : i64, scratch_operands = 0 : i64, tpu.core_type = #tpu.core_type<tc>, window_params = [{transform_indices = @transform_0, window_bounds = array<i64: 15, 8, 128>}, {transform_indices = @transform_1, window_bounds = array<i64: 1, 128>}]} {
    %0 = tpu.iota {dimensions = array<i32: 0>} : vector<8x128xi32>
    %c128_i32 = arith.constant 128 : i32
    %1 = vector.broadcast %c128_i32 : i32 to vector<8x128xi32>
    %2 = arith.muli %0, %1 : vector<8x128xi32>
    %3 = tpu.iota {dimensions = array<i32: 1>} : vector<8x128xi32>
    %4 = arith.addi %2, %3 : vector<8x128xi32>
    %c1024_i32 = arith.constant 1024 : i32
    %5 = arith.muli %arg0, %c1024_i32 : i32
    %c8_i32 = arith.constant 8 : i32
    %6 = arith.subi %c8_i32, %5 : i32
    %c0 = arith.constant 0 : index
    %c0_0 = arith.constant 0 : index
    %c0_1 = arith.constant 0 : index
    %7 = vector.load %arg1[%c0, %c0_0, %c0_1] : memref<15x8x128xf32, #tpu.memory_space<vmem>>, vector<1x8x128xf32>
    %8 = vector.shape_cast %7 : vector<1x8x128xf32> to vector<8x128xf32>
    %c1 = arith.constant 1 : index
    %c0_2 = arith.constant 0 : index
    %c0_3 = arith.constant 0 : index
    %9 = vector.load %arg1[%c1, %c0_2, %c0_3] : memref<15x8x128xf32, #tpu.memory_space<vmem>>, vector<1x8x128xf32>
    %10 = vector.shape_cast %9 : vector<1x8x128xf32> to vector<8x128xf32>
    %c2 = arith.constant 2 : index
    %c0_4 = arith.constant 0 : index
    %c0_5 = arith.constant 0 : index
    %11 = vector.load %arg1[%c2, %c0_4, %c0_5] : memref<15x8x128xf32, #tpu.memory_space<vmem>>, vector<1x8x128xf32>
    %12 = vector.shape_cast %11 : vector<1x8x128xf32> to vector<8x128xf32>
    %c3 = arith.constant 3 : index
    %c0_6 = arith.constant 0 : index
    %c0_7 = arith.constant 0 : index
    %13 = vector.load %arg1[%c3, %c0_6, %c0_7] : memref<15x8x128xf32, #tpu.memory_space<vmem>>, vector<1x8x128xf32>
    %14 = vector.shape_cast %13 : vector<1x8x128xf32> to vector<8x128xf32>
    %c4 = arith.constant 4 : index
    %c0_8 = arith.constant 0 : index
    %c0_9 = arith.constant 0 : index
    %15 = vector.load %arg1[%c4, %c0_8, %c0_9] : memref<15x8x128xf32, #tpu.memory_space<vmem>>, vector<1x8x128xf32>
    %16 = vector.shape_cast %15 : vector<1x8x128xf32> to vector<8x128xf32>
    %c5 = arith.constant 5 : index
    %c0_10 = arith.constant 0 : index
    %c0_11 = arith.constant 0 : index
    %17 = vector.load %arg1[%c5, %c0_10, %c0_11] : memref<15x8x128xf32, #tpu.memory_space<vmem>>, vector<1x8x128xf32>
    %18 = vector.shape_cast %17 : vector<1x8x128xf32> to vector<8x128xf32>
    %19 = arith.mulf %8, %8 : vector<8x128xf32>
    %20 = arith.mulf %10, %10 : vector<8x128xf32>
    %21 = arith.addf %19, %20 : vector<8x128xf32>
    %22 = arith.mulf %12, %12 : vector<8x128xf32>
    %23 = arith.addf %21, %22 : vector<8x128xf32>
    %cst = arith.constant 1.000000e-16 : f32
    %24 = vector.broadcast %cst : f32 to vector<8x128xf32>
    %25 = arith.maximumf %23, %24 : vector<8x128xf32>
    %26 = math.rsqrt %25 : vector<8x128xf32>
    %27 = arith.mulf %8, %26 : vector<8x128xf32>
    %28 = arith.mulf %10, %26 : vector<8x128xf32>
    %29 = arith.mulf %12, %26 : vector<8x128xf32>
    %30 = arith.mulf %28, %18 : vector<8x128xf32>
    %31 = arith.mulf %29, %16 : vector<8x128xf32>
    %32 = arith.subf %30, %31 : vector<8x128xf32>
    %33 = arith.mulf %29, %14 : vector<8x128xf32>
    %34 = arith.mulf %27, %18 : vector<8x128xf32>
    %35 = arith.subf %33, %34 : vector<8x128xf32>
    %36 = arith.mulf %27, %16 : vector<8x128xf32>
    %37 = arith.mulf %28, %14 : vector<8x128xf32>
    %38 = arith.subf %36, %37 : vector<8x128xf32>
    %39 = arith.mulf %32, %32 : vector<8x128xf32>
    %40 = arith.mulf %35, %35 : vector<8x128xf32>
    %41 = arith.addf %39, %40 : vector<8x128xf32>
    %42 = arith.mulf %38, %38 : vector<8x128xf32>
    %43 = arith.addf %41, %42 : vector<8x128xf32>
    %cst_12 = arith.constant 1.000000e-16 : f32
    %44 = vector.broadcast %cst_12 : f32 to vector<8x128xf32>
    %45 = arith.maximumf %43, %44 : vector<8x128xf32>
    %46 = math.rsqrt %45 : vector<8x128xf32>
    %47 = arith.mulf %32, %46 : vector<8x128xf32>
    %48 = arith.mulf %35, %46 : vector<8x128xf32>
    %49 = arith.mulf %38, %46 : vector<8x128xf32>
    %50 = arith.mulf %48, %29 : vector<8x128xf32>
    %51 = arith.mulf %49, %28 : vector<8x128xf32>
    %52 = arith.subf %50, %51 : vector<8x128xf32>
    %53 = arith.mulf %49, %27 : vector<8x128xf32>
    %54 = arith.mulf %47, %29 : vector<8x128xf32>
    %55 = arith.subf %53, %54 : vector<8x128xf32>
    %56 = arith.mulf %47, %28 : vector<8x128xf32>
    %57 = arith.mulf %48, %27 : vector<8x128xf32>
    %58 = arith.subf %56, %57 : vector<8x128xf32>
    %c6 = arith.constant 6 : index
    %c0_13 = arith.constant 0 : index
    %c0_14 = arith.constant 0 : index
    %59 = vector.load %arg1[%c6, %c0_13, %c0_14] : memref<15x8x128xf32, #tpu.memory_space<vmem>>, vector<1x8x128xf32>
    %60 = vector.shape_cast %59 : vector<1x8x128xf32> to vector<8x128xf32>
    %61 = arith.mulf %27, %60 : vector<8x128xf32>
    %c7 = arith.constant 7 : index
    %c0_15 = arith.constant 0 : index
    %c0_16 = arith.constant 0 : index
    %62 = vector.load %arg1[%c7, %c0_15, %c0_16] : memref<15x8x128xf32, #tpu.memory_space<vmem>>, vector<1x8x128xf32>
    %63 = vector.shape_cast %62 : vector<1x8x128xf32> to vector<8x128xf32>
    %64 = arith.mulf %52, %63 : vector<8x128xf32>
    %65 = arith.addf %61, %64 : vector<8x128xf32>
    %c8 = arith.constant 8 : index
    %c0_17 = arith.constant 0 : index
    %c0_18 = arith.constant 0 : index
    %66 = vector.load %arg1[%c8, %c0_17, %c0_18] : memref<15x8x128xf32, #tpu.memory_space<vmem>>, vector<1x8x128xf32>
    %67 = vector.shape_cast %66 : vector<1x8x128xf32> to vector<8x128xf32>
    %68 = arith.mulf %47, %67 : vector<8x128xf32>
    %69 = arith.addf %65, %68 : vector<8x128xf32>
    %c9 = arith.constant 9 : index
    %c0_19 = arith.constant 0 : index
    %c0_20 = arith.constant 0 : index
    %70 = vector.load %arg1[%c9, %c0_19, %c0_20] : memref<15x8x128xf32, #tpu.memory_space<vmem>>, vector<1x8x128xf32>
    %71 = vector.shape_cast %70 : vector<1x8x128xf32> to vector<8x128xf32>
    %72 = arith.mulf %28, %71 : vector<8x128xf32>
    %73 = arith.addf %69, %72 : vector<8x128xf32>
    %c10 = arith.constant 10 : index
    %c0_21 = arith.constant 0 : index
    %c0_22 = arith.constant 0 : index
    %74 = vector.load %arg1[%c10, %c0_21, %c0_22] : memref<15x8x128xf32, #tpu.memory_space<vmem>>, vector<1x8x128xf32>
    %75 = vector.shape_cast %74 : vector<1x8x128xf32> to vector<8x128xf32>
    %76 = arith.mulf %55, %75 : vector<8x128xf32>
    %77 = arith.addf %73, %76 : vector<8x128xf32>
    %c11 = arith.constant 11 : index
    %c0_23 = arith.constant 0 : index
    %c0_24 = arith.constant 0 : index
    %78 = vector.load %arg1[%c11, %c0_23, %c0_24] : memref<15x8x128xf32, #tpu.memory_space<vmem>>, vector<1x8x128xf32>
    %79 = vector.shape_cast %78 : vector<1x8x128xf32> to vector<8x128xf32>
    %80 = arith.mulf %48, %79 : vector<8x128xf32>
    %81 = arith.addf %77, %80 : vector<8x128xf32>
    %c12 = arith.constant 12 : index
    %c0_25 = arith.constant 0 : index
    %c0_26 = arith.constant 0 : index
    %82 = vector.load %arg1[%c12, %c0_25, %c0_26] : memref<15x8x128xf32, #tpu.memory_space<vmem>>, vector<1x8x128xf32>
    %83 = vector.shape_cast %82 : vector<1x8x128xf32> to vector<8x128xf32>
    %84 = arith.mulf %29, %83 : vector<8x128xf32>
    %85 = arith.addf %81, %84 : vector<8x128xf32>
    %c13 = arith.constant 13 : index
    %c0_27 = arith.constant 0 : index
    %c0_28 = arith.constant 0 : index
    %86 = vector.load %arg1[%c13, %c0_27, %c0_28] : memref<15x8x128xf32, #tpu.memory_space<vmem>>, vector<1x8x128xf32>
    %87 = vector.shape_cast %86 : vector<1x8x128xf32> to vector<8x128xf32>
    %88 = arith.mulf %58, %87 : vector<8x128xf32>
    %89 = arith.addf %85, %88 : vector<8x128xf32>
    %c14 = arith.constant 14 : index
    %c0_29 = arith.constant 0 : index
    %c0_30 = arith.constant 0 : index
    %90 = vector.load %arg1[%c14, %c0_29, %c0_30] : memref<15x8x128xf32, #tpu.memory_space<vmem>>, vector<1x8x128xf32>
    %91 = vector.shape_cast %90 : vector<1x8x128xf32> to vector<8x128xf32>
    %92 = arith.mulf %49, %91 : vector<8x128xf32>
    %93 = arith.addf %89, %92 : vector<8x128xf32>
    %cst_31 = arith.constant 1.000000e+00 : f32
    %94 = vector.broadcast %cst_31 : f32 to vector<8x128xf32>
    %95 = arith.subf %93, %94 : vector<8x128xf32>
    %cst_32 = arith.constant 5.000000e-01 : f32
    %96 = vector.broadcast %cst_32 : f32 to vector<8x128xf32>
    %97 = arith.mulf %95, %96 : vector<8x128xf32>
    %cst_33 = arith.constant -0.99999988 : f32
    %cst_34 = arith.constant 0.99999988 : f32
    %98 = vector.broadcast %cst_33 : f32 to vector<8x128xf32>
    %99 = arith.maximumf %98, %97 : vector<8x128xf32>
    %100 = vector.broadcast %cst_34 : f32 to vector<8x128xf32>
    %101 = arith.minimumf %100, %99 : vector<8x128xf32>
    %102 = math.absf %101 : vector<8x128xf32>
    %cst_35 = arith.constant -0.0012624911 : f32
    %103 = vector.broadcast %cst_35 : f32 to vector<8x128xf32>
    %104 = arith.mulf %103, %102 : vector<8x128xf32>
    %cst_36 = arith.constant 6.670090e-03 : f32
    %105 = vector.broadcast %cst_36 : f32 to vector<8x128xf32>
    %106 = arith.addf %104, %105 : vector<8x128xf32>
    %107 = arith.mulf %106, %102 : vector<8x128xf32>
    %cst_37 = arith.constant -0.0170881264 : f32
    %108 = vector.broadcast %cst_37 : f32 to vector<8x128xf32>
    %109 = arith.addf %107, %108 : vector<8x128xf32>
    %110 = arith.mulf %109, %102 : vector<8x128xf32>
    %cst_38 = arith.constant 0.0308918804 : f32
    %111 = vector.broadcast %cst_38 : f32 to vector<8x128xf32>
    %112 = arith.addf %110, %111 : vector<8x128xf32>
    %113 = arith.mulf %112, %102 : vector<8x128xf32>
    %cst_39 = arith.constant -0.0501743034 : f32
    %114 = vector.broadcast %cst_39 : f32 to vector<8x128xf32>
    %115 = arith.addf %113, %114 : vector<8x128xf32>
    %116 = arith.mulf %115, %102 : vector<8x128xf32>
    %cst_40 = arith.constant 0.0889789909 : f32
    %117 = vector.broadcast %cst_40 : f32 to vector<8x128xf32>
    %118 = arith.addf %116, %117 : vector<8x128xf32>
    %119 = arith.mulf %118, %102 : vector<8x128xf32>
    %cst_41 = arith.constant -0.214598805 : f32
    %120 = vector.broadcast %cst_41 : f32 to vector<8x128xf32>
    %121 = arith.addf %119, %120 : vector<8x128xf32>
    %122 = arith.mulf %121, %102 : vector<8x128xf32>
    %cst_42 = arith.constant 1.57079625 : f32
    %123 = vector.broadcast %cst_42 : f32 to vector<8x128xf32>
    %124 = arith.addf %122, %123 : vector<8x128xf32>
    %cst_43 = arith.constant 1.000000e+00 : f32
    %125 = vector.broadcast %cst_43 : f32 to vector<8x128xf32>
    %126 = arith.subf %125, %102 : vector<8x128xf32>
    %cst_44 = arith.constant 0.000000e+00 : f32
    %127 = vector.broadcast %cst_44 : f32 to vector<8x128xf32>
    %128 = arith.maximumf %126, %127 : vector<8x128xf32>
    %129 = math.sqrt %128 : vector<8x128xf32>
    %130 = arith.mulf %129, %124 : vector<8x128xf32>
    %cst_45 = arith.constant 0.000000e+00 : f32
    %131 = vector.broadcast %cst_45 : f32 to vector<8x128xf32>
    %132 = arith.cmpf oge, %101, %131 : vector<8x128xf32>
    %cst_46 = arith.constant 3.14159274 : f32
    %133 = vector.broadcast %cst_46 : f32 to vector<8x128xf32>
    %134 = arith.subf %133, %130 : vector<8x128xf32>
    %135 = arith.select %132, %130, %134 : vector<8x128xi1>, vector<8x128xf32>
    %c0_i32 = arith.constant 0 : i32
    %136 = arith.subi %6, %c0_i32 : i32
    %137 = vector.broadcast %136 : i32 to vector<8x128xi32>
    %138 = arith.cmpi slt, %4, %137 : vector<8x128xi32>
    %cst_47 = arith.constant 0.000000e+00 : f32
    %139 = vector.broadcast %cst_47 : f32 to vector<8x128xf32>
    %140 = arith.select %138, %135, %139 : vector<8x128xi1>, vector<8x128xf32>
    %cst_48 = arith.constant dense<0.000000e+00> : vector<128xf32>
    %141 = vector.multi_reduction <add>, %140, %cst_48 [0] : vector<8x128xf32> to vector<128xf32>
    %142 = vector.shape_cast %141 : vector<128xf32> to vector<1x128xf32>
    %c0_49 = arith.constant 0 : index
    %c0_50 = arith.constant 0 : index
    %143 = vector.load %arg2[%c0_49, %c0_50] : memref<1x128xf32, #tpu.memory_space<vmem>>, vector<1x128xf32>
    tpu.vector_store %arg2[%c0_49, %c0_50], %142 {strides = array<i32>} : memref<1x128xf32, #tpu.memory_space<vmem>>, vector<1x128xf32>,
    return
  }
  func.func @transform_0(%arg0: i32) -> (i32, i32, i32) {
    %c0_i32 = arith.constant 0 : i32
    %c0_i32_0 = arith.constant 0 : i32
    %c0_i32_1 = arith.constant 0 : i32
    return %c0_i32, %arg0, %c0_i32_0 : i32, i32, i32
  }
  func.func @transform_1(%arg0: i32) -> (i32, i32) {
    %c0_i32 = arith.constant 0 : i32
    %c0_i32_0 = arith.constant 0 : i32
    return %c0_i32, %arg0 : i32, i32
  }
}

</mosaic_0001>

<bundles_post_ra>
// kernel: tpu_custom_call.1
= control target key start
LH: loop header
LB: loop body
LE: loop exit
PB: predicated region body
PF: predicated region fallthrough
CT: control target
= control target key end

     0   :  { %6 = vsyncpa [#allocation3], 0  ;;  %s270_s0 = inlined_call_operand.hbm [shape: f32[15,8,128], index: 0, kind: input, shape index: {}]   ;;  %s271_s1 = inlined_call_operand.hbm [shape: f32[1,128], index: 1, kind: output, shape index: {}]  }
   0x1   :  { %7 = vsyncpa [#allocation4], 0  ;;  %s232_s6 = smov [#allocation2]   ;;  %s184_s10 = scalar_lea.hbm %s270_s0, 1920 }
   0x2   :  { %s13_s7 = sshll.u32 %s232_s6, 4  ;;  %p185_p0 = scmp.ne.s32.totalorder %s270_s0, %s184_s10  ;;  %s14_s7 = int_to_ptr.vmem [resolvable:$true] %s13_s7 }
   0x3   :  { %p188_p1 = scmp.lt.u32.totalorder %s184_s10, %s270_s0 }
   0x5   :  { %p190_p2 = pnand %p188_p1, %p185_p0 }
   0x7   :  { %193 = shalt.err (!%p190_p2)
}
   0x8   :  { %s194_s15 = scalar_lea.vmem %s14_s7, 1920  ;;  %p199_p4 = scmp.lt.s32.totalorder %s14_s7, %s14_s7 }
   0x9   :  { %p195_p3 = scmp.ne.s32.totalorder %s14_s7, %s194_s15  ;;  %p200_p5 = scmp.lt.s32.totalorder %s194_s15, %s194_s15 }
   0xb   :  { %p201_p6 = por %p200_p5, %p199_p4 }
   0xd   :  { %p202_p7 = pnand %p201_p6, %p195_p3 }
   0xf   :  { %205 = shalt.err (!%p202_p7)
}
  0x10   :  { %s233_s16 = smov 128   ;;  %s234_s17 = smov 8  }
  0x11   :  { %19 = dma.hbm_to_vmem [thread:$0]  %s270_s0, 1920, %s14_s7, [#allocation3], %s233_s16, %s233_s16, %s234_s17  }
  0x12   :  { %228 = dma.done.wait [#allocation3], 1920  }
  0x13   :  { %229 = vsyncadd [#allocation3], 4294965376  ;;  %v31_v0 = vld [vmem:[#allocation2] sm:$0xff]  ;;  %v33_v1 = vld [vmem:[#allocation2 + $0x8] sm:$0xff]  ;;  %s235_s0 = smov [#allocation5]  }
  0x14   :  { %v35_v2 = vld [vmem:[#allocation2 + $0x10] sm:$0xff]  ;;  %v42_v3 = vmul.f32 %v31_v0, %v31_v0  ;;  %v43_v4 = vmul.f32 %v33_v1, %v33_v1  ;;  %v37_v10 = vld [vmem:[#allocation2 + $0x18] sm:$0xff]  ;;  %v39_v11 = vld [vmem:[#allocation2 + $0x20] sm:$0xff]  ;;  %s163_s20 = sshll.u32 %s235_s0, 4  ;;  %s164_s20 = int_to_ptr.vmem [resolvable:$true] %s163_s20 }
  0x15   :  { %v45_v5 = vmul.f32 %v35_v2, %v35_v2  ;;  %v41_v12 = vld [vmem:[#allocation2 + $0x28] sm:$0xff]  ;;  %v81_v35 = vld [vmem:[#allocation2 + $0x30] sm:$0xff]  ;;  %v84_v40 = vld [vmem:[#allocation2 + $0x38] sm:$0xff]  ;;  %s206_s21 = scalar_lea.vmem %s164_s20, 16  ;;  %s210_s22 = scalar_lea.vmem %s164_s20, 32 }
  0x16   :  { %v44_v6 = vadd.f32 %v43_v4, %v42_v3  ;;  %v88_v41 = vld [vmem:[#allocation2 + $0x40] sm:$0xff]  ;;  %v92_v44 = vld [vmem:[#allocation2 + $0x48] sm:$0xff]  ;;  %v96_v48 = vld [vmem:[#allocation2 + $0x50] sm:$0xff]  ;;  %p207_p8 = scmp.ne.s32.totalorder %s164_s20, %s206_s21  ;;  %p211_p9 = scmp.lt.s32.totalorder %s164_s20, %s164_s20 }
  0x17   :  { %v100_v53 = vld [vmem:[#allocation2 + $0x58] sm:$0xff]  ;;  %v104_v56 = vld [vmem:[#allocation2 + $0x60] sm:$0xff]  ;;  %v108_v60 = vld [vmem:[#allocation2 + $0x68] sm:$0xff]  ;;  %p212_p10 = scmp.lt.s32.totalorder %s210_s22, %s206_s21 }
  0x18   :  { %v46_v7 = vadd.f32 %v45_v5, %v44_v6  ;;  %v112_v63 = vld [vmem:[#allocation2 + $0x70] sm:$0xff] }
  0x19   :  { %p213_p11 = por %p212_p10, %p211_p9 }
  0x1a   :  { %v47_v8 = vmax.f32 %v46_v7, 1e-16 }
  0x1b   :  { %p214_p12 = pnand %p213_p11, %p207_p8 }
  0x1c   :  { %178 = vrsqrt.f32 %v47_v8 }
  0x26   :  { %v179_v9 = vpop.eup %178 }
  0x27   :  { %v49_v13 = vmul.f32 %v179_v9, %v31_v0  ;;  %v50_v14 = vmul.f32 %v179_v9, %v33_v1  ;;  %v51_v15 = vmul.f32 %v179_v9, %v35_v2 }
  0x29   :  { %v52_v16 = vmul.f32 %v50_v14, %v41_v12  ;;  %v53_v17 = vmul.f32 %v51_v15, %v39_v11  ;;  %v55_v18 = vmul.f32 %v51_v15, %v37_v10  ;;  %v56_v19 = vmul.f32 %v49_v13, %v41_v12 }
  0x2a   :  { %v58_v20 = vmul.f32 %v49_v13, %v39_v11  ;;  %v59_v21 = vmul.f32 %v50_v14, %v37_v10  ;;  %v82_v43 = vmul.f32 %v81_v35, %v49_v13  ;;  %v93_v52 = vmul.f32 %v92_v44, %v50_v14 }
  0x2b   :  { %v54_v22 = vsub.f32 %v52_v16, %v53_v17  ;;  %v57_v23 = vsub.f32 %v55_v18, %v56_v19  ;;  %v105_v62 = vmul.f32 %v104_v56, %v51_v15  ;;  %v23_v19 = vlaneseq }
  0x2c   :  { %v60_v24 = vsub.f32 %v58_v20, %v59_v21 }
  0x2d   :  { %v61_v25 = vmul.f32 %v54_v22, %v54_v22  ;;  %v62_v26 = vmul.f32 %v57_v23, %v57_v23 }
  0x2e   :  { %v64_v27 = vmul.f32 %v60_v24, %v60_v24 }
  0x2f   :  { %v63_v28 = vadd.f32 %v62_v26, %v61_v25 }
  0x31   :  { %v65_v29 = vadd.f32 %v64_v27, %v63_v28  ;;  %v27_v27 = vand.u32 127, %v23_v19 }
  0x33   :  { %v66_v30 = vmax.f32 %v65_v29, 1e-16 }
  0x35   :  { %180 = vrsqrt.f32 %v66_v30 }
  0x3f   :  { %v181_v31 = vpop.eup %180 }
  0x40   :  { %v68_v32 = vmul.f32 %v181_v31, %v54_v22  ;;  %v69_v33 = vmul.f32 %v181_v31, %v57_v23  ;;  %v70_v34 = vmul.f32 %v181_v31, %v60_v24  ;;  %v24_v23 = vshrl.u32 %v23_v19, 7 }
  0x42   :  { %v71_v36 = vmul.f32 %v69_v33, %v51_v15  ;;  %v72_v37 = vmul.f32 %v70_v34, %v50_v14  ;;  %v74_v38 = vmul.f32 %v70_v34, %v49_v13  ;;  %v75_v39 = vmul.f32 %v68_v32, %v51_v15 }
  0x43   :  { %v89_v47 = vmul.f32 %v88_v41, %v68_v32  ;;  %v77_v49 = vmul.f32 %v68_v32, %v50_v14  ;;  %v78_v50 = vmul.f32 %v69_v33, %v49_v13  ;;  %v101_v59 = vmul.f32 %v100_v53, %v69_v33 }
  0x44   :  { %v73_v42 = vsub.f32 %v71_v36, %v72_v37  ;;  %v76_v45 = vsub.f32 %v74_v38, %v75_v39  ;;  %v113_v3 = vmul.f32 %v112_v63, %v70_v34  ;;  %v25_v29 = vmul.u32 128, %v24_v23 }
  0x45   :  { %v79_v57 = vsub.f32 %v77_v49, %v78_v50 }
  0x46   :  { %v85_v46 = vmul.f32 %v84_v40, %v73_v42  ;;  %v97_v55 = vmul.f32 %v96_v48, %v76_v45  ;;  %v28_v34 = vadd.s32 %v27_v27, %v25_v29 }
  0x47   :  { %v109_v1 = vmul.f32 %v108_v60, %v79_v57 }
  0x48   :  { %v86_v51 = vadd.f32 %v85_v46, %v82_v43  ;;  %vm148_vm3 = vcmp.lt.s32.totalorder %v28_v34, 8 }
  0x4a   :  { %v90_v54 = vadd.f32 %v89_v47, %v86_v51 }
  0x4c   :  { %v94_v58 = vadd.f32 %v93_v52, %v90_v54 }
  0x4e   :  { %v98_v61 = vadd.f32 %v97_v55, %v94_v58 }
  0x50   :  { %v102_v0 = vadd.f32 %v101_v59, %v98_v61 }
  0x52   :  { %v106_v2 = vadd.f32 %v105_v62, %v102_v0 }
  0x54   :  { %v110_v4 = vadd.f32 %v109_v1, %v106_v2 }
  0x56   :  { %v114_v5 = vadd.f32 %v113_v3, %v110_v4 }
  0x58   :  { %v172_v6 = vadd.f32 -1.0, %v114_v5 }
  0x5a   :  { %v116_v7 = vmul.f32 0.5, %v172_v6 }
  0x5c   :  { %v173_v8 = vclamps-f32 %v116_v7, 0.9999999 }
  0x5e   :  { %v119_v9 = vand.u32 2147483647, %v173_v8  ;;  %vm144_vm2 = vcmp.ge.f32.partialorder %v173_v8, 0.0 }
  0x60   :  { %v120_v10 = vmul.f32 -0.0012624911, %v119_v9  ;;  %v134_v11 = vsub.f32 1.0, %v119_v9 }
  0x62   :  { %v121_v12 = vadd.f32 0.00667009, %v120_v10  ;;  %v135_v13 = vmax.f32 %v134_v11, 0.0 }
  0x64   :  { %v122_v14 = vmul.f32 %v121_v12, %v119_v9  ;;  %182 = vrsqrt.f32 %v135_v13  ;;  %vm138_vm0 = vcmp.eq.f32.partialorder %v135_v13, inf  ;;  %v141_v28 = vand.u32 2147483648, %v135_v13 }
  0x65   :  { %vm140_vm1 = vcmp.eq.f32.partialorder %v135_v13, 0.0 }
  0x66   :  { %v123_v16 = vadd.f32 -0.017088126, %v122_v14 }
  0x68   :  { %v124_v17 = vmul.f32 %v123_v16, %v119_v9 }
  0x6a   :  { %v125_v15 = vadd.f32 0.03089188, %v124_v17 }
  0x6c   :  { %v126_v18 = vmul.f32 %v125_v15, %v119_v9 }
  0x6e   :  { %v127_v20 = vadd.f32 -0.050174303, %v126_v18  ;;  %v183_v21 = vpop.eup %182 }
  0x6f   :  { %v137_v25 = vmul.f32 %v183_v21, %v135_v13 }
  0x70   :  { %v128_v22 = vmul.f32 %v127_v20, %v119_v9 }
  0x71   :  { %v139_v31 = vsel %vm138_vm0, %v135_v13, %v137_v25 }
  0x72   :  { %v129_v24 = vadd.f32 0.08897899, %v128_v22  ;;  %v142_v33 = vsel %vm140_vm1, %v141_v28, %v139_v31 }
  0x74   :  { %v130_v26 = vmul.f32 %v129_v24, %v119_v9 }
  0x76   :  { %v131_v30 = vadd.f32 -0.2145988, %v130_v26 }
  0x78   :  { %v132_v32 = vmul.f32 %v131_v30, %v119_v9 }
  0x7a   :  { %v133_v35 = vadd.f32 1.5707963, %v132_v32 }
  0x7c   :  { %v143_v36 = vmul.f32 %v142_v33, %v133_v35 }
  0x7e   :  { %v145_v37 = vsub.f32 3.1415927, %v143_v36 }
  0x80   :  { %v146_v38 = vsel %vm144_vm2, %v143_v36, %v145_v37 }
  0x81   :  { %v149_v39 = vsel %vm148_vm3, %v146_v38, 0.0 }
  0x82   :  { %v150_v40 = vrot.slane %v149_v39, 4 }
  0x84   :  { %v151_v41 = vadd.f32 %v150_v40, %v149_v39 }
  0x86   :  { %v152_v42 = vrot.slane %v151_v41, 2 }
  0x88   :  { %v153_v43 = vadd.f32 %v152_v42, %v151_v41 }
  0x8a   :  { %v154_v44 = vrot.slane %v153_v43, 1 }
  0x8c   :  { %v155_v45 = vadd.f32 %v154_v44, %v153_v43 }
  0x8e   :  { %156 = vst [vmem:[#allocation5] sm:$0x1] %v155_v45 }
  0x8f   :  { %217 = shalt.err (!%p214_p12)
}
  0x90   :  { %s218_s25 = scalar_lea.hbm %s271_s1, 16 }
  0x91   :  { %p219_p13 = scmp.ne.s32.totalorder %s271_s1, %s218_s25  ;;  %p222_p0 = scmp.lt.u32.totalorder %s218_s25, %s271_s1 }
  0x93   :  { %p224_p1 = pnand %p222_p0, %p219_p13 }
  0x95   :  { %227 = shalt.err (!%p224_p1)
}
  0x96   :  { %166 = dma.vmem_to_hbm [thread:$0]  %s164_s20, 16, %s271_s1, [#allocation4]  }
  0x97   :  { %230 = dma.done.wait [#allocation4], 16  }
  0x98   :  { %231 = vsyncadd [#allocation4], 4294967280 }
  0x99   :  { %170 = vsyncpa [#allocation3], 1 }
  0x9a   :  { %171 = vsyncpa [#allocation4], 1 }

</bundles_post_ra>
